<compile_context>
chip_gen: v7x
topology: tpu7x:2x2x1
jax: 0.10.0
libtpu: 0.0.40
codegen_flags: <defaults>
</compile_context>

<pallas_src>
import functools

import numpy as np
import jax
import jax.numpy as jnp
from jax.experimental import pallas as pl
from jax.experimental.pallas import tpu as pltpu


def _readout_kernel(*refs, way):
    """Process one tile of TB batch elements (batch is the lane/minor axis everywhere)."""
    if way == 0:
        x_ref, emb_ref, w1_ref, w2_ref, b1_ref, b2_ref, o_ref = refs
    else:
        x_ref, emb_ref, w1_ref, w2_ref, aw_ref, o_ref = refs

    D, C, TB = x_ref.shape          # D = 3**way equivariant components, TB = batch tile
    E = emb_ref.shape[0]

    w1 = w1_ref[...]                # [C, E*C]  (col index = e*C + c), MXU dtype
    mxu_dtype = w1.dtype
    emb_raw = emb_ref[...]          # [E, TB]   MXU dtype (kept for the layer-2 dot)
    emb_f32 = emb_raw.astype(jnp.float32)
    emb_b = emb_f32[:, None, :]     # [E, 1, TB]  (hoisted out of the d loop)

    # ---- layer1: TensorBiLinear(n_dim, e_dim, n_dim) -------------------------
    #   h_d[o, b] = sum_{e,c} W1[o,c,e] * emb[e,b] * x[c,d,b]
    # Build xe[(e,c), b] = emb[e,b] * x[c,d,b] on the VPU (f32 multiply, rounded to the MXU
    # dtype) and contract the full (e,c) axis on the MXU: M=C, K=E*C, N=TB.
    hs = []
    for d in range(D):                                          # D <= 3**way, static unroll
        x_d = x_ref[d].astype(jnp.float32)                      # [C, TB]
        xe = (emb_b * x_d[None, :, :]).astype(mxu_dtype)        # [E, C, TB]
        xe = xe.reshape(E * C, TB)                              # layout-trivial leading merge
        hs.append(jnp.dot(w1, xe, preferred_element_type=jnp.float32))   # [C, TB] f32

    # ---- TensorActivate('silu') — all f32 -----------------------------------
    if way == 0:
        hs = [jax.nn.silu(hs[0] + b1_ref[...])]                 # bias then plain silu
    else:
        # TODO(synk): hotpp's activate.py was not provided; gated equivariant form
        # h * silu(act_w[c] * ||h_c||^2) with per-channel weight (init = 1) assumed.
        sq = hs[0] * hs[0]
        for d in range(1, D):
            sq = sq + hs[d] * hs[d]                             # [C, TB]
        gate = jax.nn.silu(aw_ref[...] * sq)                    # [C, TB]
        hs = [h * gate for h in hs]

    # ---- layer2: TensorBiLinear(n_dim, e_dim, 1) ------------------------------
    wg2 = jnp.dot(w2_ref[...], emb_raw, preferred_element_type=jnp.float32)   # [C, TB] f32
    rows = [jnp.sum(wg2 * h, axis=0, keepdims=True) for h in hs]              # D x [1, TB]
    y = rows[0] if D == 1 else jnp.concatenate(rows, axis=0)                  # [D, TB]
    if way == 0:
        y = y + b2_ref[0]                                       # scalar bias from SMEM
    o_ref[...] = y.astype(o_ref.dtype)


def readout_bilinear_mlp(x, emb, params, *, way, batch_tile=1024,
                         mxu_dtype=jnp.bfloat16):
    """Pallas forward of ReadoutBiLinearMLP.

    mxu_dtype: dtype of the matmul operands (bf16 by default per perf review;
    pass jnp.float32 for near-exact parity with the f32 reference).
    """
    B, C = x.shape[0], x.shape[1]
    E = emb.shape[1]
    spatial = x.shape[2:]
    assert len(spatial) == way
    D = int(np.prod(spatial)) if way > 0 else 1

    # ---- HBM-side layout plumbing: batch on the lane (minor) axis everywhere ----
    # (transpose + dtype cast fuse into a single XLA copy pass)
    x_t = jnp.transpose(x.reshape(B, C, D), (2, 1, 0)).astype(mxu_dtype)   # [D, C, B]
    emb_t = emb.T.astype(mxu_dtype)                                        # [E, B]
    # W1_flat[o, e*C + c] = W1[o, c, e]  — matches xe[(e,c), b]
    w1_r = jnp.transpose(params["w1"], (0, 2, 1)).reshape(C, E * C).astype(mxu_dtype)
    w2_r = params["w2"].reshape(C, E).astype(mxu_dtype)                    # [c, e]

    # ---- Batch tile: multiple of 128 lanes, big enough to amortize grid overhead,
    # but split small batches into >= 2 steps so both v7x TensorCores get work.
    lane_groups = -(-B // 128)                    # 128-lane groups needed to cover B
    max_groups = max(1, batch_tile // 128)
    if lane_groups >= 2 * max_groups:
        TB = 128 * max_groups
    elif lane_groups >= 2:
        TB = 128 * (-(-lane_groups // 2))         # exactly 2 grid steps
    else:
        TB = 128
    B_pad = TB * (-(-B // TB))
    if B_pad != B:
        x_t = jnp.pad(x_t, ((0, 0), (0, 0), (0, B_pad - B)))
        emb_t = jnp.pad(emb_t, ((0, 0), (0, B_pad - B)))

    in_arrays = [x_t, emb_t, w1_r, w2_r]
    in_specs = [
        pl.BlockSpec((D, C, TB), lambda i: (0, 0, i)),    # x tile  (batch on lanes)
        pl.BlockSpec((E, TB), lambda i: (0, i)),          # emb tile (batch on lanes)
        pl.BlockSpec((C, E * C), lambda i: (0, 0)),       # W1' (resident, not re-fetched)
        pl.BlockSpec((C, E), lambda i: (0, 0)),           # W2  (resident)
    ]
    if way == 0:
        in_arrays += [params["b1"].astype(jnp.float32).reshape(C, 1),
                      params["b2"].astype(jnp.float32).reshape(1)]
        in_specs += [
            pl.BlockSpec((C, 1), lambda i: (0, 0)),                      # b1 (f32)
            pl.BlockSpec(memory_space=pltpu.MemorySpace.SMEM),           # b2 scalar (f32)
        ]
    else:
        in_arrays += [params["act_w"].astype(jnp.float32).reshape(C, 1)]
        in_specs += [pl.BlockSpec((C, 1), lambda i: (0, 0))]             # act weight (f32)

    kernel = functools.partial(_readout_kernel, way=way)
    out = pl.pallas_call(
        kernel,
        out_shape=jax.ShapeDtypeStruct((D, B_pad), x.dtype),
        grid=(B_pad // TB,),
        in_specs=in_specs,
        out_specs=pl.BlockSpec((D, TB), lambda i: (0, i)),   # lane-dense output tile
        compiler_params=pltpu.CompilerParams(
            dimension_semantics=("parallel",),
            vmem_limit_bytes=32 * 1024 * 1024,               # budgeted for v7x scoped VMEM
        ),
    )(*in_arrays)

    y = out[:, :B].T                                          # tiny [D, B] -> [B, D]
    if way == 0:
        return y.reshape(B, 1)
    return y.reshape((B, 1) + spatial)


def init_params(key, n_dim, e_dim, way, dtype=jnp.float32):
    """Deterministic synthetic init (torch.nn.Bilinear-style bounds)."""
    k1, k2, k3, k4 = jax.random.split(key, 4)
    bound = 1.0 / np.sqrt(n_dim)
    w1 = jax.random.uniform(k1, (n_dim, n_dim, e_dim), dtype, -bound, bound)
    w2 = jax.random.uniform(k2, (1, n_dim, e_dim), dtype, -bound, bound)
    if way == 0:
        b1 = jax.random.uniform(k3, (n_dim,), dtype, -bound, bound)
        b2 = jax.random.uniform(k4, (1,), dtype, -bound, bound)
    else:  # bias only exists when way == 0
        b1 = jnp.zeros((n_dim,), dtype)
        b2 = jnp.zeros((1,), dtype)
    act_w = jnp.ones((n_dim,), dtype)  # TensorActivate per-channel weight
    return dict(w1=w1, b1=b1, act_w=act_w, w2=w2, b2=b2)


def reference(x, emb, params, way):
    """Pure-JAX f32 reference of the same semantics."""
    B, C = x.shape[0], x.shape[1]
    D = int(np.prod(x.shape[2:])) if way > 0 else 1
    xf = x.reshape(B, C, D)
    hp = jax.lax.Precision.HIGHEST
    h = jnp.einsum('oce,bcd,be->bod', params["w1"], xf, emb, precision=hp)
    if way == 0:
        h = h + params["b1"][None, :, None]
        h = jax.nn.silu(h)
    else:
        sq = jnp.sum(h * h, axis=-1, keepdims=True)
        h = h * jax.nn.silu(params["act_w"][None, :, None] * sq)
    y = jnp.einsum('oce,bcd,be->bod', params["w2"], h, emb, precision=hp)
    if way == 0:
        y = y + params["b2"][None, :, None]
        return y.reshape(B, 1)
    return y.reshape((B, 1) + x.shape[2:])


def _assert_close(out, ref, rel, what):
    """Max-error check relative to the output scale (bf16-aware)."""
    scale = float(jnp.maximum(jnp.max(jnp.abs(ref)), 1.0))
    err = float(jnp.max(jnp.abs(out.astype(jnp.float32) - ref.astype(jnp.float32))))
    assert err <= rel * scale, f"{what}: max err {err:.3e} > {rel:.1e} * scale {scale:.3e}"


if __name__ == "__main__":
    key = jax.random.PRNGKey(0)
    kx, ke, kp, kx0, kp0 = jax.random.split(key, 5)

    B, n_dim, e_dim = 2, 32, 16
    emb = jax.random.normal(ke, (B, e_dim), jnp.float32)

    # way = 1 (vector readout): bias disabled, gated tensor activation.
    x1 = jax.random.normal(kx, (B, n_dim, 3), jnp.float32)
    params1 = init_params(kp, n_dim, e_dim, way=1)
    ref1 = reference(x1, emb, params1, way=1)

    out1 = readout_bilinear_mlp(x1, emb, params1, way=1)           # bf16 MXU (default)
    jax.block_until_ready(out1)
    assert out1.shape == (B, 1, 3)
    # bf16 operand rounding is amplified by the ||h||^2 gate -> 2e-2 relative budget.
    _assert_close(out1, ref1, 2e-2, "way=1 bf16")

    out1_f32 = readout_bilinear_mlp(x1, emb, params1, way=1, mxu_dtype=jnp.float32)
    jax.block_until_ready(out1_f32)
    _assert_close(out1_f32, ref1, 2e-3, "way=1 f32")

    # way = 0 (scalar readout): biases enabled, plain silu.
    x0 = jax.random.normal(kx0, (B, n_dim), jnp.float32)
    params0 = init_params(kp0, n_dim, e_dim, way=0)
    ref0 = reference(x0, emb, params0, way=0)

    out0 = readout_bilinear_mlp(x0, emb, params0, way=0)           # bf16 MXU (default)
    jax.block_until_ready(out0)
    assert out0.shape == (B, 1)
    _assert_close(out0, ref0, 2e-2, "way=0 bf16")

    out0_f32 = readout_bilinear_mlp(x0, emb, params0, way=0, mxu_dtype=jnp.float32)
    jax.block_until_ready(out0_f32)
    _assert_close(out0_f32, ref0, 2e-3, "way=0 f32")

    print("KERNEL_OK")
</pallas_src>

<mosaic_0001>
module attributes {stable_mosaic.version = 11 : i64} {
  func.func @_readout_kernel(%arg0: i32, %arg1: memref<3x32x128xbf16, #tpu.memory_space<vmem>>, %arg2: memref<16x128xbf16, #tpu.memory_space<vmem>>, %arg3: memref<32x512xbf16, #tpu.memory_space<vmem>>, %arg4: memref<32x16xbf16, #tpu.memory_space<vmem>>, %arg5: memref<32x1xf32, #tpu.memory_space<vmem>>, %arg6: memref<3x128xf32, #tpu.memory_space<vmem>>) attributes {dimension_semantics = [#tpu.dimension_semantics<parallel>], iteration_bounds = array<i64: 1>, scalar_prefetch = 0 : i64, scratch_operands = 0 : i64, tpu.core_type = #tpu.core_type<tc>, window_params = [{transform_indices = @transform_0, window_bounds = array<i64: 3, 32, 128>}, {transform_indices = @transform_1, window_bounds = array<i64: 16, 128>}, {pipeline_mode = #tpu.pipeline_mode<synchronous>, transform_indices = @transform_2, window_bounds = array<i64: 32, 512>}, {pipeline_mode = #tpu.pipeline_mode<synchronous>, transform_indices = @transform_3, window_bounds = array<i64: 32, 16>}, {pipeline_mode = #tpu.pipeline_mode<synchronous>, transform_indices = @transform_4, window_bounds = array<i64: 32, 1>}, {transform_indices = @transform_5, window_bounds = array<i64: 3, 128>}]} {
    %c0 = arith.constant 0 : index
    %c0_0 = arith.constant 0 : index
    %0 = vector.load %arg3[%c0, %c0_0] : memref<32x512xbf16, #tpu.memory_space<vmem>>, vector<32x512xbf16>
    %c0_1 = arith.constant 0 : index
    %c0_2 = arith.constant 0 : index
    %1 = vector.load %arg2[%c0_1, %c0_2] : memref<16x128xbf16, #tpu.memory_space<vmem>>, vector<16x128xbf16>
    %2 = arith.extf %1 : vector<16x128xbf16> to vector<16x128xf32>
    %3 = vector.shape_cast %2 : vector<16x128xf32> to vector<16x1x128xf32>
    %c0_3 = arith.constant 0 : index
    %c0_4 = arith.constant 0 : index
    %c0_5 = arith.constant 0 : index
    %4 = vector.load %arg1[%c0_3, %c0_4, %c0_5] : memref<3x32x128xbf16, #tpu.memory_space<vmem>>, vector<1x32x128xbf16>
    %5 = vector.shape_cast %4 : vector<1x32x128xbf16> to vector<32x128xbf16>
    %6 = arith.extf %5 : vector<32x128xbf16> to vector<32x128xf32>
    %7 = vector.shape_cast %6 : vector<32x128xf32> to vector<1x32x128xf32>
    %8 = vector.broadcast %3 : vector<16x1x128xf32> to vector<16x32x128xf32>
    %9 = vector.broadcast %7 : vector<1x32x128xf32> to vector<16x32x128xf32>
    %10 = arith.mulf %8, %9 : vector<16x32x128xf32>
    %11 = arith.truncf %10 : vector<16x32x128xf32> to vector<16x32x128xbf16>
    %12 = vector.shape_cast %11 : vector<16x32x128xbf16> to vector<512x128xbf16>
    %cst = arith.constant dense<0.000000e+00> : vector<32x128xf32>
    %13 = tpu.matmul %0, %12, %cst {dimension_numbers = #tpu.dot_dimension_numbers<[1], [0], [0], [1], [0, 0, 1, 1], [], []>} : vector<32x512xbf16>, vector<512x128xbf16>, vector<32x128xf32> -> vector<32x128xf32>
    %c1 = arith.constant 1 : index
    %c0_6 = arith.constant 0 : index
    %c0_7 = arith.constant 0 : index
    %14 = vector.load %arg1[%c1, %c0_6, %c0_7] : memref<3x32x128xbf16, #tpu.memory_space<vmem>>, vector<1x32x128xbf16>
    %15 = vector.shape_cast %14 : vector<1x32x128xbf16> to vector<32x128xbf16>
    %16 = arith.extf %15 : vector<32x128xbf16> to vector<32x128xf32>
    %17 = vector.shape_cast %16 : vector<32x128xf32> to vector<1x32x128xf32>
    %18 = vector.broadcast %3 : vector<16x1x128xf32> to vector<16x32x128xf32>
    %19 = vector.broadcast %17 : vector<1x32x128xf32> to vector<16x32x128xf32>
    %20 = arith.mulf %18, %19 : vector<16x32x128xf32>
    %21 = arith.truncf %20 : vector<16x32x128xf32> to vector<16x32x128xbf16>
    %22 = vector.shape_cast %21 : vector<16x32x128xbf16> to vector<512x128xbf16>
    %cst_8 = arith.constant dense<0.000000e+00> : vector<32x128xf32>
    %23 = tpu.matmul %0, %22, %cst_8 {dimension_numbers = #tpu.dot_dimension_numbers<[1], [0], [0], [1], [0, 0, 1, 1], [], []>} : vector<32x512xbf16>, vector<512x128xbf16>, vector<32x128xf32> -> vector<32x128xf32>
    %c2 = arith.constant 2 : index
    %c0_9 = arith.constant 0 : index
    %c0_10 = arith.constant 0 : index
    %24 = vector.load %arg1[%c2, %c0_9, %c0_10] : memref<3x32x128xbf16, #tpu.memory_space<vmem>>, vector<1x32x128xbf16>
    %25 = vector.shape_cast %24 : vector<1x32x128xbf16> to vector<32x128xbf16>
    %26 = arith.extf %25 : vector<32x128xbf16> to vector<32x128xf32>
    %27 = vector.shape_cast %26 : vector<32x128xf32> to vector<1x32x128xf32>
    %28 = vector.broadcast %3 : vector<16x1x128xf32> to vector<16x32x128xf32>
    %29 = vector.broadcast %27 : vector<1x32x128xf32> to vector<16x32x128xf32>
    %30 = arith.mulf %28, %29 : vector<16x32x128xf32>
    %31 = arith.truncf %30 : vector<16x32x128xf32> to vector<16x32x128xbf16>
    %32 = vector.shape_cast %31 : vector<16x32x128xbf16> to vector<512x128xbf16>
    %cst_11 = arith.constant dense<0.000000e+00> : vector<32x128xf32>
    %33 = tpu.matmul %0, %32, %cst_11 {dimension_numbers = #tpu.dot_dimension_numbers<[1], [0], [0], [1], [0, 0, 1, 1], [], []>} : vector<32x512xbf16>, vector<512x128xbf16>, vector<32x128xf32> -> vector<32x128xf32>
    %34 = arith.mulf %13, %13 : vector<32x128xf32>
    %35 = arith.mulf %23, %23 : vector<32x128xf32>
    %36 = arith.addf %34, %35 : vector<32x128xf32>
    %37 = arith.mulf %33, %33 : vector<32x128xf32>
    %38 = arith.addf %36, %37 : vector<32x128xf32>
    %c0_12 = arith.constant 0 : index
    %c0_13 = arith.constant 0 : index
    %39 = vector.load %arg5[%c0_12, %c0_13] : memref<32x1xf32, #tpu.memory_space<vmem>>, vector<32x1xf32>
    %40 = vector.broadcast %39 : vector<32x1xf32> to vector<32x128xf32>
    %41 = arith.mulf %40, %38 : vector<32x128xf32>
    %42 = arith.negf %41 : vector<32x128xf32>
    %43 = math.exp %42 : vector<32x128xf32>
    %cst_14 = arith.constant 1.000000e+00 : f32
    %44 = vector.broadcast %cst_14 : f32 to vector<32x128xf32>
    %45 = arith.addf %44, %43 : vector<32x128xf32>
    %46 = arith.divf %44, %45 : vector<32x128xf32>
    %47 = arith.mulf %41, %46 : vector<32x128xf32>
    %48 = arith.mulf %13, %47 : vector<32x128xf32>
    %49 = arith.mulf %23, %47 : vector<32x128xf32>
    %50 = arith.mulf %33, %47 : vector<32x128xf32>
    %c0_15 = arith.constant 0 : index
    %c0_16 = arith.constant 0 : index
    %51 = vector.load %arg4[%c0_15, %c0_16] : memref<32x16xbf16, #tpu.memory_space<vmem>>, vector<32x16xbf16>
    %cst_17 = arith.constant dense<0.000000e+00> : vector<32x128xf32>
    %52 = tpu.matmul %51, %1, %cst_17 {dimension_numbers = #tpu.dot_dimension_numbers<[1], [0], [0], [1], [0, 0, 1, 1], [], []>} : vector<32x16xbf16>, vector<16x128xbf16>, vector<32x128xf32> -> vector<32x128xf32>
    %53 = arith.mulf %52, %48 : vector<32x128xf32>
    %cst_18 = arith.constant dense<0.000000e+00> : vector<128xf32>
    %54 = vector.multi_reduction <add>, %53, %cst_18 [0] : vector<32x128xf32> to vector<128xf32>
    %55 = vector.shape_cast %54 : vector<128xf32> to vector<1x128xf32>
    %56 = arith.mulf %52, %49 : vector<32x128xf32>
    %cst_19 = arith.constant dense<0.000000e+00> : vector<128xf32>
    %57 = vector.multi_reduction <add>, %56, %cst_19 [0] : vector<32x128xf32> to vector<128xf32>
    %58 = vector.shape_cast %57 : vector<128xf32> to vector<1x128xf32>
    %59 = arith.mulf %52, %50 : vector<32x128xf32>
    %cst_20 = arith.constant dense<0.000000e+00> : vector<128xf32>
    %60 = vector.multi_reduction <add>, %59, %cst_20 [0] : vector<32x128xf32> to vector<128xf32>
    %61 = vector.shape_cast %60 : vector<128xf32> to vector<1x128xf32>
    %62 = tpu.concatenate %55, %58, %61 in 0 : vector<1x128xf32>, vector<1x128xf32>, vector<1x128xf32> -> vector<3x128xf32>
    %c0_21 = arith.constant 0 : index
    %c0_22 = arith.constant 0 : index
    %63 = vector.load %arg6[%c0_21, %c0_22] : memref<3x128xf32, #tpu.memory_space<vmem>>, vector<3x128xf32>
    tpu.vector_store %arg6[%c0_21, %c0_22], %62 {strides = array<i32>} : memref<3x128xf32, #tpu.memory_space<vmem>>, vector<3x128xf32>,
    return
  }
  func.func @transform_0(%arg0: i32) -> (i32, i32, i32) {
    %c0_i32 = arith.constant 0 : i32
    %c0_i32_0 = arith.constant 0 : i32
    %c0_i32_1 = arith.constant 0 : i32
    return %c0_i32, %c0_i32_0, %arg0 : i32, i32, i32
  }
  func.func @transform_1(%arg0: i32) -> (i32, i32) {
    %c0_i32 = arith.constant 0 : i32
    %c0_i32_0 = arith.constant 0 : i32
    return %c0_i32, %arg0 : i32, i32
  }
  func.func @transform_2(%arg0: i32) -> (i32, i32) {
    %c0_i32 = arith.constant 0 : i32
    %c0_i32_0 = arith.constant 0 : i32
    %c0_i32_1 = arith.constant 0 : i32
    return %c0_i32, %c0_i32_0 : i32, i32
  }
  func.func @transform_3(%arg0: i32) -> (i32, i32) {
    %c0_i32 = arith.constant 0 : i32
    %c0_i32_0 = arith.constant 0 : i32
    %c0_i32_1 = arith.constant 0 : i32
    return %c0_i32, %c0_i32_0 : i32, i32
  }
  func.func @transform_4(%arg0: i32) -> (i32, i32) {
    %c0_i32 = arith.constant 0 : i32
    %c0_i32_0 = arith.constant 0 : i32
    %c0_i32_1 = arith.constant 0 : i32
    return %c0_i32, %c0_i32_0 : i32, i32
  }
  func.func @transform_5(%arg0: i32) -> (i32, i32) {
    %c0_i32 = arith.constant 0 : i32
    %c0_i32_0 = arith.constant 0 : i32
    return %c0_i32, %arg0 : i32, i32
  }
}

</mosaic_0001>

<bundles_post_ra>
// kernel: tpu_custom_call.1
= control target key start
LH: loop header
LB: loop body
LE: loop exit
PB: predicated region body
PF: predicated region fallthrough
CT: control target
= control target key end

     0   :  { %10 = vsyncpa [#allocation3], 0  ;;  %s2175_s0 = inlined_call_operand.hbm [shape: bf16[3,32,128], index: 0, kind: input, shape index: {}]   ;;  %s2176_s1 = inlined_call_operand.hbm [shape: bf16[16,128], index: 1, kind: input, shape index: {}]   ;;  %s2177_s2 = inlined_call_operand.vmem [shape: bf16[32,512], index: 2, kind: input, shape index: {}]   ;;  %s2178_s3 = inlined_call_operand.vmem [shape: bf16[32,16], index: 3, kind: input, shape index: {}]   ;;  %s2179_s4 = inlined_call_operand.vmem [shape: f32[32,1], index: 4, kind: input, shape index: {}]   ;;  %s2180_s5 = inlined_call_operand.hbm [shape: f32[3,128], index: 5, kind: output, shape index: {}]  }
   0x1   :  { %11 = vsyncpa [#allocation6], 0 }
   0x2   :  { %12 = vsyncpa [#allocation4], 0  ;;  %s1448_s18 = smov [#allocation2]   ;;  %s1376_s22 = scalar_lea.hbm %s2175_s0, 768 }
   0x3   :  { %s18_s19 = sshll.u32 %s1448_s18, 4  ;;  %p1377_p0 = scmp.ne.s32.totalorder %s2175_s0, %s1376_s22  ;;  %s19_s19 = int_to_ptr.vmem [resolvable:$true] %s18_s19 }
   0x4   :  { %p1380_p1 = scmp.lt.u32.totalorder %s1376_s22, %s2175_s0 }
   0x6   :  { %p1382_p2 = pnand %p1380_p1, %p1377_p0 }
   0x8   :  { %1385 = shalt.err (!%p1382_p2)
}
   0x9   :  { %s1386_s27 = scalar_lea.vmem %s19_s19, 768  ;;  %p1391_p4 = scmp.lt.s32.totalorder %s19_s19, %s19_s19 }
   0xa   :  { %p1387_p3 = scmp.ne.s32.totalorder %s19_s19, %s1386_s27  ;;  %p1392_p5 = scmp.lt.s32.totalorder %s1386_s27, %s1386_s27 }
   0xc   :  { %p1393_p6 = por %p1392_p5, %p1391_p4 }
   0xe   :  { %p1394_p7 = pnand %p1393_p6, %p1387_p3 }
  0x10   :  { %1397 = shalt.err (!%p1394_p7)
}
  0x11   :  { %s1449_s28 = smov 64   ;;  %s1450_s29 = smov 4  }
  0x12   :  { %24 = dma.hbm_to_vmem [thread:$0]  %s2175_s0, 768, %s19_s19, [#allocation3], %s1449_s28, %s1449_s28, %s1450_s29  }
  0x13   :  { %s1451_s7 = smov [#allocation5]   ;;  %s1398_s11 = scalar_lea.hbm %s2176_s1, 128 }
  0x14   :  { %s30_s8 = sshll.u32 %s1451_s7, 4  ;;  %p1399_p8 = scmp.ne.s32.totalorder %s2176_s1, %s1398_s11  ;;  %s31_s8 = int_to_ptr.vmem [resolvable:$true] %s30_s8 }
  0x15   :  { %p1402_p9 = scmp.lt.u32.totalorder %s1398_s11, %s2176_s1 }
  0x17   :  { %p1404_p10 = pnand %p1402_p9, %p1399_p8 }
  0x19   :  { %1407 = shalt.err (!%p1404_p10)
}
  0x1a   :  { %s1408_s16 = scalar_lea.vmem %s31_s8, 128  ;;  %p1413_p12 = scmp.lt.s32.totalorder %s31_s8, %s31_s8 }
  0x1b   :  { %p1409_p11 = scmp.ne.s32.totalorder %s31_s8, %s1408_s16  ;;  %p1414_p13 = scmp.lt.s32.totalorder %s1408_s16, %s1408_s16 }
  0x1d   :  { %p1415_p0 = por %p1414_p13, %p1413_p12 }
  0x1f   :  { %p1416_p1 = pnand %p1415_p0, %p1409_p11 }
  0x21   :  { %1419 = shalt.err (!%p1416_p1)
}
  0x22   :  { %36 = dma.hbm_to_vmem [thread:$0]  %s2176_s1, 128, %s31_s8, [#allocation6], %s1449_s28, %s1449_s28, %s1450_s29  }
  0x23   :  { %1442 = dma.done.wait [#allocation3], 768  }
  0x24   :  { %1443 = vsyncadd [#allocation3], 4294966528 }
  0x25   :  { %1444 = dma.done.wait [#allocation6], 128  }
  0x26   :  { %1445 = vsyncadd [#allocation6], 4294967168  ;;  %v68_v0 = vlaneseq  ;;  %v1452_v1 = vmov 1966171168   ;;  %v1511_v6 = vld [vmem:[#allocation5] sm:$0xff]   ;;  %v1132_v7 = vld [vmem:[#allocation2] sm:$0xff]  }
  0x27   :  { %v66_v2 = vunpack.c.l.s4 %v1452_v1  ;;  %v1155_v8 = vld [vmem:[#allocation2 + $0x8] sm:$0xff]   ;;  %v60_v9 = vunpack.c.l.bf16 %v1511_v6  ;;  %v61_v10 = vunpack.c.h.bf16 %v1511_v6  ;;  %v1518_v11 = vld [vmem:[%s2177_s2 + $0x4] ss:$16 sps:$4 sm:$0xff]   ;;  %v1453_v12 = vmov 0  }
  0x28   :  { %v69_v3 = vshrl.u32 %v68_v0, 7  ;;  %1342 = vset.pattern.permute.xlu0 %v1453_v12  ;;  %1343 = vset.pattern.permute.xlu1 %v1453_v12  ;;  %v1523_v13 = vld [vmem:[%s2177_s2 + $0xc] ss:$16 sps:$4 sm:$0xff]   ;;  %v1532_v18 = vunpack.c.l.bf16 %v1132_v7  ;;  %v1534_v19 = vunpack.c.h.bf16 %v1132_v7  ;;  %v1545_v24 = vunpack.c.l.bf16 %v1155_v8  ;;  %v910_v41 = vld [vmem:[%s2179_s4] sm:$0xff]  ;;  %v912_v46 = vld [vmem:[%s2179_s4 + $0x10] sm:$0xff] }
  0x29   :  { %v67_v4 = vunpack.c.0.s8 %v66_v2  ;;  %v64_v14 = vcombine.high %v60_v9, %v60_v9  ;;  %v113_v15 = vcombine.high %v61_v10, %v61_v10  ;;  %418 = vmatprep.mubr.bf16.mxu0 %v1518_v11  ;;  %467 = vmatprep.mubr.bf16.mxu1 %v1523_v13  ;;  %v1555_v28 = vunpack.c.h.bf16 %v1155_v8  ;;  %v911_v51 = vld [vmem:[%s2179_s4 + $0x8] sm:$0xff] }
  0x2a   :  { %v1536_v20 = vsub.s32 0, %v69_v3  ;;  %916 = vperm.xlu0 %1342, %v910_v41   ;;  %926 = vperm.xlu1 %1343, %v912_v46   ;;  %vm998_vm0 = vcmask 130048   ;;  %vm1093_vm1 = vcmask 1040384   ;;  %vm1095_vm2 = vcmask 1041408  }
  0x2b   :  { %v1509_v5 = vsub.s32 %v67_v4, %v69_v3  ;;  %v913_v3 = vld [vmem:[%s2179_s4 + $0x18] sm:$0xff] }
  0x2d   :  { %v1526_v16 = vrot.slane %v60_v9, %v1509_v5  ;;  %v1529_v17 = vrot.slane %v61_v10, %v1509_v5  ;;  %v78_v21 = vrot.slane %v64_v14, %v1509_v5  ;;  %v127_v22 = vrot.slane %v113_v15, %v1509_v5 }
  0x2e   :  { %921 = vperm.xlu0 %1342, %v911_v51   ;;  %931 = vperm.xlu1 %1343, %v913_v3  }
  0x2f   :  { %v1543_v23 = vrot.slane %v1526_v16, %v1509_v5  ;;  %v79_v25 = vcombine.high %v1526_v16, %v1526_v16  ;;  %v128_v26 = vcombine.high %v1529_v17, %v1529_v17  ;;  %v1553_v27 = vrot.slane %v1529_v17, %v1509_v5 }
  0x30   :  { %v80_v29 = vcombine.high %v78_v21, %v78_v21  ;;  %v94_v30 = vrot.slane %v78_v21, %v1509_v5  ;;  %v129_v31 = vcombine.high %v127_v22, %v127_v22  ;;  %v143_v32 = vrot.slane %v127_v22, %v1509_v5 }
  0x31   :  { %v109_v33 = vcombine.high %v1543_v23, %v1543_v23  ;;  %v1563_v34 = vrot.slane %v1543_v23, %v1536_v20  ;;  %v158_v35 = vcombine.high %v1553_v27, %v1553_v27  ;;  %v1569_v36 = vrot.slane %v1553_v27, %v1536_v20 }
  0x32   :  { %v110_v37 = vcombine.high %v94_v30, %v94_v30  ;;  %v1572_v38 = vrot.slane %v94_v30, %v1536_v20  ;;  %v159_v39 = vcombine.high %v143_v32, %v143_v32  ;;  %v1575_v40 = vrot.slane %v143_v32, %v1536_v20 }
  0x33   :  { %v250_v42 = vmul.f32 %v1532_v18, %v1563_v34  ;;  %v251_v43 = vmul.f32 %v1534_v19, %v1563_v34  ;;  %v282_v44 = vmul.f32 %v1532_v18, %v1569_v36  ;;  %v283_v45 = vmul.f32 %v1534_v19, %v1569_v36 }
  0x34   :  { %v266_v47 = vmul.f32 %v1532_v18, %v1572_v38  ;;  %v267_v48 = vmul.f32 %v1534_v19, %v1572_v38  ;;  %v298_v49 = vmul.f32 %v1532_v18, %v1575_v40  ;;  %v299_v50 = vmul.f32 %v1534_v19, %v1575_v40 }
  0x35   :  { %v314_v52 = vpack.c.bf16 %v251_v43, %v250_v42  ;;  %v330_v53 = vpack.c.bf16 %v283_v45, %v282_v44  ;;  %v268_v54 = vmul.f32 %v1545_v24, %v1572_v38  ;;  %v269_v55 = vmul.f32 %v1555_v28, %v1572_v38 }
  0x36   :  { %v322_v56 = vpack.c.bf16 %v267_v48, %v266_v47  ;;  %v338_v57 = vpack.c.bf16 %v299_v50, %v298_v49  ;;  %v300_v58 = vmul.f32 %v1545_v24, %v1575_v40  ;;  %v301_v59 = vmul.f32 %v1555_v28, %v1575_v40 }
  0x37   :  { %v323_v60 = vpack.c.bf16 %v269_v55, %v268_v54  ;;  %v252_v61 = vmul.f32 %v1545_v24, %v1563_v34  ;;  %v253_v62 = vmul.f32 %v1555_v28, %v1563_v34  ;;  %v284_v63 = vmul.f32 %v1545_v24, %v1569_v36 }
  0x38   :  { %1158 = vmatprep.subr.bf16.mxu0 %v322_v56  ;;  %1186 = vmatprep.subr.bf16.mxu1 %v338_v57  ;;  %v339_v0 = vpack.c.bf16 %v301_v59, %v300_v58  ;;  %v285_v1 = vmul.f32 %v1555_v28, %v1569_v36  ;;  %v1619_v2 = vrot.slane %v80_v29, %v1509_v5  ;;  %v1140_v59 = vld [vmem:[#allocation2 + $0x10] sm:$0xff]  }
  0x39   :  { %1159 = vmatpush3.bf16.msra.mxu0 %v314_v52  ;;  %1187 = vmatpush3.bf16.msra.mxu1 %v330_v53  ;;  %v315_v4 = vpack.c.bf16 %v253_v62, %v252_v61  ;;  %v1625_v7 = vrot.slane %v129_v31, %v1509_v5  ;;  %v1628_v8 = vrot.slane %v79_v25, %v1509_v5 }
  0x3a   :  { %1160 = vmatprep.subr.bf16.mxu0 %v323_v60  ;;  %1188 = vmatprep.subr.bf16.mxu1 %v339_v0  ;;  %v331_v9 = vpack.c.bf16 %v285_v1, %v284_v63  ;;  %v1632_v10 = vrot.slane %v1619_v2, %v1536_v20  ;;  %v1635_v12 = vrot.slane %v128_v26, %v1509_v5 }
  0x3b   :  { %v1639_v14 = vrot.slane %v1625_v7, %v1536_v20  ;;  %v1643_v15 = vrot.slane %v1628_v8, %v1536_v20  ;;  %v1646_v16 = vrot.slane %v110_v37, %v1536_v20  ;;  %v1649_v17 = vrot.slane %v159_v39, %v1536_v20 }
  0x3c   :  { %v270_v21 = vmul.f32 %v1532_v18, %v1632_v10  ;;  %v271_v5 = vmul.f32 %v1534_v19, %v1632_v10  ;;  %v1657_v22 = vrot.slane %v1635_v12, %v1536_v20  ;;  %v272_v25 = vmul.f32 %v1545_v24, %v1632_v10 }
  0x3d   :  { %1161 = vmatpush3.bf16.msra.mxu0 %v315_v4  ;;  %1189 = vmatpush3.bf16.msra.mxu1 %v331_v9  ;;  %v302_v26 = vmul.f32 %v1532_v18, %v1639_v14  ;;  %v303_v29 = vmul.f32 %v1534_v19, %v1639_v14  ;;  %v254_v30 = vmul.f32 %v1532_v18, %v1643_v15  ;;  %v1721_v4 = vunpack.c.l.bf16 %v1140_v59 }
  0x3e   :  { %v324_v31 = vpack.c.bf16 %v271_v5, %v270_v21  ;;  %v255_v32 = vmul.f32 %v1534_v19, %v1643_v15  ;;  %v286_v37 = vmul.f32 %v1532_v18, %v1657_v22  ;;  %v287_v39 = vmul.f32 %v1534_v19, %v1657_v22 }
  0x3f   :  { %v340_v41 = vpack.c.bf16 %v303_v29, %v302_v26  ;;  %v273_v42 = vmul.f32 %v1555_v28, %v1632_v10  ;;  %v304_v43 = vmul.f32 %v1545_v24, %v1639_v14  ;;  %v305_v44 = vmul.f32 %v1555_v28, %v1639_v14 }
  0x40   :  { %1162 = vmatprep.subr.bf16.mxu0 %v324_v31  ;;  %v316_v45 = vpack.c.bf16 %v255_v32, %v254_v30  ;;  %v332_v46 = vpack.c.bf16 %v287_v39, %v286_v37  ;;  %v256_v47 = vmul.f32 %v1545_v24, %v1643_v15  ;;  %v257_v48 = vmul.f32 %v1555_v28, %v1643_v15  ;;  %v1156_v32 = vld [vmem:[#allocation2 + $0x18] sm:$0xff]  }
  0x41   :  { %1190 = vmatprep.subr.bf16.mxu1 %v340_v41  ;;  %v325_v49 = vpack.c.bf16 %v273_v42, %v272_v25  ;;  %v341_v50 = vpack.c.bf16 %v305_v44, %v304_v43  ;;  %v288_v51 = vmul.f32 %v1545_v24, %v1657_v22  ;;  %v289_v52 = vmul.f32 %v1555_v28, %v1657_v22 }
  0x42   :  { %1163 = vmatpush3.bf16.msra.mxu0 %v316_v45  ;;  %1191 = vmatpush3.bf16.msra.mxu1 %v332_v46  ;;  %v317_v53 = vpack.c.bf16 %v257_v48, %v256_v47  ;;  %v274_v54 = vmul.f32 %v1532_v18, %v1646_v16  ;;  %v275_v55 = vmul.f32 %v1534_v19, %v1646_v16  ;;  %v1725_v25 = vunpack.c.h.bf16 %v1140_v59 }
  0x43   :  { %1164 = vmatprep.subr.bf16.mxu0 %v325_v49  ;;  %1192 = vmatprep.subr.bf16.mxu1 %v341_v50  ;;  %v333_v56 = vpack.c.bf16 %v289_v52, %v288_v51  ;;  %v306_v57 = vmul.f32 %v1532_v18, %v1649_v17  ;;  %v307_v58 = vmul.f32 %v1534_v19, %v1649_v17  ;;  %v1753_v48 = vunpack.c.l.bf16 %v1156_v32 }
  0x44   :  { %v326_v60 = vpack.c.bf16 %v275_v55, %v274_v54  ;;  %v1699_v61 = vrot.slane %v109_v33, %v1536_v20  ;;  %v1705_v62 = vrot.slane %v158_v35, %v1536_v20  ;;  %v276_v63 = vmul.f32 %v1545_v24, %v1646_v16 }
  0x45   :  { %v342_v0 = vpack.c.bf16 %v307_v58, %v306_v57  ;;  %v277_v1 = vmul.f32 %v1555_v28, %v1646_v16  ;;  %v308_v3 = vmul.f32 %v1545_v24, %v1649_v17  ;;  %v309_v23 = vmul.f32 %v1555_v28, %v1649_v17 }
  0x46   :  { %1165 = vmatpush3.bf16.msra.mxu0 %v317_v53  ;;  %1193 = vmatpush3.bf16.msra.mxu1 %v333_v56  ;;  %v258_v27 = vmul.f32 %v1532_v18, %v1699_v61  ;;  %v259_v33 = vmul.f32 %v1534_v19, %v1699_v61  ;;  %v290_v35 = vmul.f32 %v1532_v18, %v1705_v62 }
  0x47   :  { %1166 = vmatprep.subr.bf16.mxu0 %v326_v60  ;;  %1194 = vmatprep.subr.bf16.mxu1 %v342_v0  ;;  %v291_v9 = vmul.f32 %v1534_v19, %v1705_v62  ;;  %v327_v21 = vpack.c.bf16 %v277_v1, %v276_v63  ;;  %v343_v5 = vpack.c.bf16 %v309_v23, %v308_v3 }
  0x48   :  { %v318_v26 = vpack.c.bf16 %v259_v33, %v258_v27  ;;  %v260_v29 = vmul.f32 %v1545_v24, %v1699_v61  ;;  %v261_v30 = vmul.f32 %v1555_v28, %v1699_v61  ;;  %v292_v31 = vmul.f32 %v1545_v24, %v1705_v62 }
  0x49   :  { %v334_v37 = vpack.c.bf16 %v291_v9, %v290_v35  ;;  %v293_v39 = vmul.f32 %v1555_v28, %v1705_v62  ;;  %v112_v41 = vcombine.high %v1619_v2, %v1619_v2  ;;  %v161_v42 = vcombine.high %v1625_v7, %v1625_v7 }
  0x4a   :  { %1167 = vmatpush3.bf16.msra.mxu0 %v318_v26  ;;  %v319_v43 = vpack.c.bf16 %v261_v30, %v260_v29  ;;  %v111_v44 = vcombine.high %v1628_v8, %v1628_v8  ;;  %v160_v45 = vcombine.high %v1635_v12, %v1635_v12  ;;  %v1745_v46 = vmul.f32 %v1721_v4, %v1572_v38 }
  0x4b   :  { %1195 = vmatpush3.bf16.msra.mxu1 %v334_v37  ;;  %1168 = vmatprep.subr.bf16.mxu0 %v327_v21  ;;  %v335_v47 = vpack.c.bf16 %v293_v39, %v292_v31  ;;  %v1748_v2 = vrot.slane %v112_v41, %v1536_v20  ;;  %v1751_v7 = vrot.slane %v161_v42, %v1536_v20  ;;  %v1793_v33 = vunpack.c.h.bf16 %v1156_v32  ;;  %v1813_v37 = vld [vmem:[%s2177_s2] ss:$16 sps:$4 sm:$0xff]  }
  0x4c   :  { %1196 = vmatprep.subr.bf16.mxu1 %v343_v5  ;;  %v1756_v8 = vrot.slane %v111_v44, %v1536_v20  ;;  %v1759_v12 = vrot.slane %v160_v45, %v1536_v20  ;;  %v510_v49 = vmul.f32 %v1725_v25, %v1572_v38  ;;  %v541_v50 = vmul.f32 %v1721_v4, %v1575_v40  ;;  %v1824_v44 = vld [vmem:[%s2177_s2 + $0x8] ss:$16 sps:$4 sm:$0xff]  }
  0x4d   :  { %v278_v51 = vmul.f32 %v1532_v18, %v1748_v2  ;;  %v279_v52 = vmul.f32 %v1534_v19, %v1748_v2  ;;  %v310_v53 = vmul.f32 %v1532_v18, %v1751_v7  ;;  %v311_v54 = vmul.f32 %v1534_v19, %v1751_v7 }
  0x4e   :  { %1169 = vmatpush3.bf16.msra.mxu0 %v319_v43  ;;  %v262_v20 = vmul.f32 %v1532_v18, %v1756_v8  ;;  %v263_v55 = vmul.f32 %v1534_v19, %v1756_v8  ;;  %v294_v56 = vmul.f32 %v1532_v18, %v1759_v12  ;;  %v295_v57 = vmul.f32 %v1534_v19, %v1759_v12 }
  0x4f   :  { %1197 = vmatpush3.bf16.msra.mxu1 %v335_v47  ;;  %v328_v58 = vpack.c.bf16 %v279_v52, %v278_v51  ;;  %v344_v59 = vpack.c.bf16 %v311_v54, %v310_v53  ;;  %v280_v60 = vmul.f32 %v1545_v24, %v1748_v2  ;;  %v281_v63 = vmul.f32 %v1555_v28, %v1748_v2 }
  0x50   :  { %v320_v0 = vpack.c.bf16 %v263_v55, %v262_v20  ;;  %v336_v1 = vpack.c.bf16 %v295_v57, %v294_v56  ;;  %v312_v3 = vmul.f32 %v1545_v24, %v1751_v7  ;;  %v313_v18 = vmul.f32 %v1555_v28, %v1751_v7 }
  0x51   :  { %1170 = vmatprep.subr.bf16.mxu0 %v328_v58  ;;  %1198 = vmatprep.subr.bf16.mxu1 %v344_v59  ;;  %v329_v19 = vpack.c.bf16 %v281_v63, %v280_v60  ;;  %v264_v23 = vmul.f32 %v1545_v24, %v1756_v8  ;;  %v265_v27 = vmul.f32 %v1555_v28, %v1756_v8  ;;  %v1848_v59 = vld [vmem:[%s2177_s2 + $0x24] ss:$16 sps:$4 sm:$0xff]  }
  0x52   :  { %1171 = vmatpush3.bf16.msra.mxu0 %v320_v0  ;;  %v345_v35 = vpack.c.bf16 %v313_v18, %v312_v3  ;;  %v296_v9 = vmul.f32 %v1545_v24, %v1759_v12  ;;  %v297_v21 = vmul.f32 %v1555_v28, %v1759_v12  ;;  %v565_v5 = vpack.c.bf16 %v510_v49, %v1745_v46 }
  0x53   :  { %1199 = vmatpush3.bf16.msra.mxu1 %v336_v1  ;;  %1172 = vmatprep.subr.bf16.mxu0 %v329_v19  ;;  %v321_v26 = vpack.c.bf16 %v265_v27, %v264_v23  ;;  %v542_v29 = vmul.f32 %v1725_v25, %v1575_v40  ;;  %v493_v30 = vmul.f32 %v1721_v4, %v1563_v34 }
  0x54   :  { %1200 = vmatprep.subr.bf16.mxu1 %v345_v35  ;;  %v337_v31 = vpack.c.bf16 %v297_v21, %v296_v9  ;;  %v494_v32 = vmul.f32 %v1725_v25, %v1563_v34  ;;  %v525_v24 = vmul.f32 %v1721_v4, %v1569_v36  ;;  %v526_v28 = vmul.f32 %v1725_v25, %v1569_v36 }
  0x55   :  { %v581_v39 = vpack.c.bf16 %v542_v29, %v541_v50  ;;  %v511_v41 = vmul.f32 %v1753_v48, %v1572_v38  ;;  %v512_v42 = vmul.f32 %v1793_v33, %v1572_v38  ;;  %v543_v43 = vmul.f32 %v1753_v48, %v1575_v40 }
  0x56   :  { %1173 = vmatpush3.bf16.msra.mxu0 %v321_v26  ;;  %v557_v45 = vpack.c.bf16 %v494_v32, %v493_v30  ;;  %v573_v46 = vpack.c.bf16 %v526_v28, %v525_v24  ;;  %v544_v47 = vmul.f32 %v1793_v33, %v1575_v40  ;;  %v495_v49 = vmul.f32 %v1753_v48, %v1563_v34  ;;  %v1875_v26 = vld [vmem:[%s2177_s2 + $0x2c] ss:$16 sps:$4 sm:$0xff]  }
  0x57   :  { %1201 = vmatpush3.bf16.msra.mxu1 %v337_v31  ;;  %1214 = vmatprep.subr.bf16.mxu0 %v565_v5  ;;  %v566_v50 = vpack.c.bf16 %v512_v42, %v511_v41  ;;  %v496_v51 = vmul.f32 %v1793_v33, %v1563_v34  ;;  %v527_v52 = vmul.f32 %v1753_v48, %v1569_v36 }
  0x58   :  { %1242 = vmatprep.subr.bf16.mxu1 %v581_v39  ;;  %v582_v53 = vpack.c.bf16 %v544_v47, %v543_v43  ;;  %v528_v54 = vmul.f32 %v1793_v33, %v1569_v36  ;;  %v513_v20 = vmul.f32 %v1721_v4, %v1632_v10  ;;  %v514_v55 = vmul.f32 %v1725_v25, %v1632_v10  ;;  %v1893_v47 = vld [vmem:[%s2177_s2 + $0x20] ss:$16 sps:$4 sm:$0xff]  }
  0x59   :  { %419 = vmatmul.mubr.bf16.vlgmr.msra.gmra.mrb[0].mxu0 %v1813_v37  ;;  %v558_v56 = vpack.c.bf16 %v496_v51, %v495_v49  ;;  %v545_v57 = vmul.f32 %v1721_v4, %v1639_v14  ;;  %v546_v58 = vmul.f32 %v1725_v25, %v1639_v14  ;;  %v497_v63 = vmul.f32 %v1721_v4, %v1643_v15  ;;  %v1898_v49 = vld [vmem:[%s2177_s2 + $0x28] ss:$16 sps:$4 sm:$0xff]  }
  0x5a   :  { %468 = vmatmul.mubr.bf16.vlgmr.msra.gmra.mrb[0].mxu1 %v1824_v44  ;;  %1215 = vmatpush3.bf16.msra.mxu0 %v557_v45  ;;  %v574_v60 = vpack.c.bf16 %v528_v54, %v527_v52  ;;  %v498_v0 = vmul.f32 %v1725_v25, %v1643_v15  ;;  %v567_v1 = vpack.c.bf16 %v514_v55, %v513_v20 }
  0x5b   :  { %1243 = vmatpush3.bf16.msra.mxu1 %v573_v46  ;;  %1216 = vmatprep.subr.bf16.mxu0 %v566_v50  ;;  %v529_v3 = vmul.f32 %v1721_v4, %v1657_v22  ;;  %v530_v18 = vmul.f32 %v1725_v25, %v1657_v22  ;;  %v583_v19 = vpack.c.bf16 %v546_v58, %v545_v57 }
  0x5c   :  { %1244 = vmatprep.subr.bf16.mxu1 %v582_v53  ;;  %v515_v23 = vmul.f32 %v1753_v48, %v1632_v10  ;;  %v516_v27 = vmul.f32 %v1793_v33, %v1632_v10  ;;  %v547_v35 = vmul.f32 %v1753_v48, %v1639_v14  ;;  %v548_v9 = vmul.f32 %v1793_v33, %v1639_v14 }
  0x5d   :  { %v499_v21 = vmul.f32 %v1753_v48, %v1643_v15  ;;  %v500_v5 = vmul.f32 %v1793_v33, %v1643_v15  ;;  %426 = vmatprep.mubr.bf16.mxu0 %v1848_v59  ;;  %v559_v29 = vpack.c.bf16 %v498_v0, %v497_v63  ;;  %v575_v30 = vpack.c.bf16 %v530_v18, %v529_v3 }
  0x5e   :  { %1217 = vmatpush3.bf16.msra.mxu0 %v558_v56  ;;  %v531_v31 = vmul.f32 %v1753_v48, %v1657_v22  ;;  %v532_v32 = vmul.f32 %v1793_v33, %v1657_v22  ;;  %v568_v24 = vpack.c.bf16 %v516_v27, %v515_v23  ;;  %v517_v28 = vmul.f32 %v1721_v4, %v1646_v16 }
  0x5f   :  { %1245 = vmatpush3.bf16.msra.mxu1 %v574_v60  ;;  %1218 = vmatprep.subr.bf16.mxu0 %v567_v1  ;;  %v518_v39 = vmul.f32 %v1725_v25, %v1646_v16  ;;  %v584_v41 = vpack.c.bf16 %v548_v9, %v547_v35  ;;  %v549_v42 = vmul.f32 %v1721_v4, %v1649_v17 }
  0x60   :  { %1246 = vmatprep.subr.bf16.mxu1 %v583_v19  ;;  %v550_v43 = vmul.f32 %v1725_v25, %v1649_v17  ;;  %v560_v45 = vpack.c.bf16 %v500_v5, %v499_v21  ;;  %v576_v46 = vpack.c.bf16 %v532_v32, %v531_v31  ;;  %475 = vmatprep.mubr.bf16.mxu1 %v1875_v26  ;;  %v1148_v19 = vld [vmem:[#allocation2 + $0x20] sm:$0xff]  }
  0x61   :  { %v501_v50 = vmul.f32 %v1721_v4, %v1699_v61  ;;  %v502_v51 = vmul.f32 %v1725_v25, %v1699_v61  ;;  %v533_v52 = vmul.f32 %v1721_v4, %v1705_v62  ;;  %v534_v53 = vmul.f32 %v1725_v25, %v1705_v62  ;;  %427 = vmatmul.mubr.bf16.gmra.mrb[4].mxu0 %v1893_v47 }
  0x62   :  { %1219 = vmatpush3.bf16.msra.mxu0 %v559_v29  ;;  %v569_v54 = vpack.c.bf16 %v518_v39, %v517_v28  ;;  %v519_v20 = vmul.f32 %v1753_v48, %v1646_v16  ;;  %v520_v55 = vmul.f32 %v1793_v33, %v1646_v16  ;;  %v585_v56 = vpack.c.bf16 %v550_v43, %v549_v42 }
  0x63   :  { %1247 = vmatpush3.bf16.msra.mxu1 %v575_v30  ;;  %1220 = vmatprep.subr.bf16.mxu0 %v568_v24  ;;  %v551_v57 = vmul.f32 %v1753_v48, %v1649_v17  ;;  %v552_v58 = vmul.f32 %v1793_v33, %v1649_v17  ;;  %v503_v60 = vmul.f32 %v1753_v48, %v1699_v61  ;;  %v1935_v31 = vunpack.c.l.bf16 %v1148_v19 }
  0x64   :  { %1248 = vmatprep.subr.bf16.mxu1 %v584_v41  ;;  %v504_v63 = vmul.f32 %v1793_v33, %v1699_v61  ;;  %v535_v0 = vmul.f32 %v1753_v48, %v1705_v62  ;;  %v536_v1 = vmul.f32 %v1793_v33, %v1705_v62  ;;  %476 = vmatmul.mubr.bf16.gmra.mrb[4].mxu1 %v1898_v49 }
  0x65   :  { %v561_v3 = vpack.c.bf16 %v502_v51, %v501_v50  ;;  %v577_v18 = vpack.c.bf16 %v534_v53, %v533_v52  ;;  %v570_v23 = vpack.c.bf16 %v520_v55, %v519_v20  ;;  %v521_v27 = vmul.f32 %v1721_v4, %v1748_v2  ;;  %621 = vmatprep.mubr.bf16.mxu0 %v1518_v11 }
  0x66   :  { %1221 = vmatpush3.bf16.msra.mxu0 %v560_v45  ;;  %v522_v35 = vmul.f32 %v1725_v25, %v1748_v2  ;;  %v586_v9 = vpack.c.bf16 %v552_v58, %v551_v57  ;;  %v553_v21 = vmul.f32 %v1721_v4, %v1751_v7  ;;  %v554_v5 = vmul.f32 %v1725_v25, %v1751_v7 }
  0x67   :  { %1249 = vmatpush3.bf16.msra.mxu1 %v576_v46  ;;  %1222 = vmatprep.subr.bf16.mxu0 %v569_v54  ;;  %v562_v29 = vpack.c.bf16 %v504_v63, %v503_v60  ;;  %v578_v30 = vpack.c.bf16 %v536_v1, %v535_v0  ;;  %v505_v32 = vmul.f32 %v1721_v4, %v1756_v8  ;;  %v1949_v45 = vunpack.c.h.bf16 %v1148_v19  ;;  %v1157_v46 = vld [vmem:[#allocation2 + $0x28] sm:$0xff]  }
  0x68   :  { %1250 = vmatprep.subr.bf16.mxu1 %v585_v56  ;;  %v506_v24 = vmul.f32 %v1725_v25, %v1756_v8  ;;  %v537_v28 = vmul.f32 %v1721_v4, %v1759_v12  ;;  %v538_v39 = vmul.f32 %v1725_v25, %v1759_v12  ;;  %v571_v41 = vpack.c.bf16 %v522_v35, %v521_v27 }
  0x69   :  { %v523_v42 = vmul.f32 %v1753_v48, %v1748_v2  ;;  %v524_v43 = vmul.f32 %v1793_v33, %v1748_v2  ;;  %v587_v50 = vpack.c.bf16 %v554_v5, %v553_v21  ;;  %v555_v4 = vmul.f32 %v1753_v48, %v1751_v7  ;;  %670 = vmatprep.mubr.bf16.mxu1 %v1523_v13 }
  0x6a   :  { %1223 = vmatpush3.bf16.msra.mxu0 %v561_v3  ;;  %v556_v25 = vmul.f32 %v1793_v33, %v1751_v7  ;;  %v507_v51 = vmul.f32 %v1753_v48, %v1756_v8  ;;  %v508_v52 = vmul.f32 %v1793_v33, %v1756_v8  ;;  %v539_v53 = vmul.f32 %v1753_v48, %v1759_v12 }
  0x6b   :  { %1251 = vmatpush3.bf16.msra.mxu1 %v577_v18  ;;  %1224 = vmatprep.subr.bf16.mxu0 %v570_v23  ;;  %v540_v54 = vmul.f32 %v1793_v33, %v1759_v12  ;;  %v563_v20 = vpack.c.bf16 %v506_v24, %v505_v32  ;;  %v579_v55 = vpack.c.bf16 %v538_v39, %v537_v28  ;;  %v1964_v56 = vunpack.c.l.bf16 %v1157_v46 }
  0x6c   :  { %1252 = vmatprep.subr.bf16.mxu1 %v586_v9  ;;  %v572_v57 = vpack.c.bf16 %v524_v43, %v523_v42  ;;  %v712_v58 = vmul.f32 %v1935_v31, %v1572_v38  ;;  %v713_v60 = vmul.f32 %v1949_v45, %v1572_v38  ;;  %v1970_v63 = vunpack.c.h.bf16 %v1157_v46 }
  0x6d   :  { %v588_v48 = vpack.c.bf16 %v556_v25, %v555_v4  ;;  %v744_v33 = vmul.f32 %v1935_v31, %v1575_v40  ;;  %v745_v0 = vmul.f32 %v1949_v45, %v1575_v40  ;;  %v564_v1 = vpack.c.bf16 %v508_v52, %v507_v51 }
  0x6e   :  { %1225 = vmatpush3.bf16.msra.mxu0 %v562_v29  ;;  %v580_v3 = vpack.c.bf16 %v540_v54, %v539_v53  ;;  %v696_v18 = vmul.f32 %v1935_v31, %v1563_v34  ;;  %v697_v19 = vmul.f32 %v1949_v45, %v1563_v34  ;;  %v728_v23 = vmul.f32 %v1935_v31, %v1569_v36 }
  0x6f   :  { %1253 = vmatpush3.bf16.msra.mxu1 %v578_v30  ;;  %1226 = vmatprep.subr.bf16.mxu0 %v571_v41  ;;  %v729_v27 = vmul.f32 %v1949_v45, %v1569_v36  ;;  %v768_v35 = vpack.c.bf16 %v713_v60, %v712_v58  ;;  %v714_v9 = vmul.f32 %v1964_v56, %v1572_v38 }
  0x70   :  { %1254 = vmatprep.subr.bf16.mxu1 %v587_v50  ;;  %v715_v21 = vmul.f32 %v1970_v63, %v1572_v38  ;;  %v784_v5 = vpack.c.bf16 %v745_v0, %v744_v33  ;;  %v746_v29 = vmul.f32 %v1964_v56, %v1575_v40  ;;  %v747_v30 = vmul.f32 %v1970_v63, %v1575_v40 }
  0x71   :  { %v698_v32 = vmul.f32 %v1964_v56, %v1563_v34  ;;  %v699_v24 = vmul.f32 %v1970_v63, %v1563_v34  ;;  %v730_v28 = vmul.f32 %v1964_v56, %v1569_v36  ;;  %v731_v38 = vmul.f32 %v1970_v63, %v1569_v36 }
  0x72   :  { %1227 = vmatpush3.bf16.msra.mxu0 %v563_v20  ;;  %v760_v39 = vpack.c.bf16 %v697_v19, %v696_v18  ;;  %v776_v41 = vpack.c.bf16 %v729_v27, %v728_v23  ;;  %v769_v42 = vpack.c.bf16 %v715_v21, %v714_v9  ;;  %v716_v40 = vmul.f32 %v1935_v31, %v1632_v10 }
  0x73   :  { %1255 = vmatpush3.bf16.msra.mxu1 %v579_v55  ;;  %1228 = vmatprep.subr.bf16.mxu0 %v572_v57  ;;  %v717_v43 = vmul.f32 %v1949_v45, %v1632_v10  ;;  %v785_v34 = vpack.c.bf16 %v747_v30, %v746_v29  ;;  %v748_v46 = vmul.f32 %v1935_v31, %v1639_v14 }
  0x74   :  { %1256 = vmatprep.subr.bf16.mxu1 %v588_v48  ;;  %v749_v36 = vmul.f32 %v1949_v45, %v1639_v14  ;;  %v761_v50 = vpack.c.bf16 %v699_v24, %v698_v32  ;;  %v777_v4 = vpack.c.bf16 %v731_v38, %v730_v28  ;;  %v700_v25 = vmul.f32 %v1935_v31, %v1643_v15 }
  0x75   :  { %v701_v51 = vmul.f32 %v1949_v45, %v1643_v15  ;;  %v732_v52 = vmul.f32 %v1935_v31, %v1657_v22  ;;  %v733_v53 = vmul.f32 %v1949_v45, %v1657_v22  ;;  %v770_v54 = vpack.c.bf16 %v717_v43, %v716_v40 }
  0x76   :  { %1229 = vmatpush3.bf16.msra.mxu0 %v564_v1  ;;  %v718_v20 = vmul.f32 %v1964_v56, %v1632_v10  ;;  %v719_v55 = vmul.f32 %v1970_v63, %v1632_v10  ;;  %v786_v57 = vpack.c.bf16 %v749_v36, %v748_v46  ;;  %v750_v58 = vmul.f32 %v1964_v56, %v1639_v14 }
  0x77   :  { %1257 = vmatpush3.bf16.msra.mxu1 %v580_v3  ;;  %1270 = vmatprep.subr.bf16.mxu0 %v768_v35  ;;  %v751_v60 = vmul.f32 %v1970_v63, %v1639_v14  ;;  %v702_v48 = vmul.f32 %v1964_v56, %v1643_v15  ;;  %v703_v33 = vmul.f32 %v1970_v63, %v1643_v15 }
  0x78   :  { %1298 = vmatprep.subr.bf16.mxu1 %v784_v5  ;;  %v734_v10 = vmul.f32 %v1964_v56, %v1657_v22  ;;  %v735_v0 = vmul.f32 %v1970_v63, %v1657_v22  ;;  %v762_v1 = vpack.c.bf16 %v701_v51, %v700_v25  ;;  %v778_v3 = vpack.c.bf16 %v733_v53, %v732_v52 }
  0x79   :  { %622 = vmatmul.mubr.bf16.vlgmr.msra.gmra.mrb[8].mxu0 %v1813_v37  ;;  %v771_v14 = vpack.c.bf16 %v719_v55, %v718_v20  ;;  %v720_v18 = vmul.f32 %v1935_v31, %v1646_v16  ;;  %v721_v19 = vmul.f32 %v1949_v45, %v1646_v16  ;;  %v787_v15 = vpack.c.bf16 %v751_v60, %v750_v58 }
  0x7a   :  { %671 = vmatmul.mubr.bf16.vlgmr.msra.gmra.mrb[8].mxu1 %v1824_v44  ;;  %1271 = vmatpush3.bf16.msra.mxu0 %v760_v39  ;;  %v752_v23 = vmul.f32 %v1935_v31, %v1649_v17  ;;  %v753_v22 = vmul.f32 %v1949_v45, %v1649_v17  ;;  %v763_v27 = vpack.c.bf16 %v703_v33, %v702_v48 }
  0x7b   :  { %1299 = vmatpush3.bf16.msra.mxu1 %v776_v41  ;;  %1272 = vmatprep.subr.bf16.mxu0 %v769_v42  ;;  %v779_v35 = vpack.c.bf16 %v735_v0, %v734_v10  ;;  %v704_v9 = vmul.f32 %v1935_v31, %v1699_v61  ;;  %v705_v21 = vmul.f32 %v1949_v45, %v1699_v61 }
  0x7c   :  { %1300 = vmatprep.subr.bf16.mxu1 %v785_v34  ;;  %629 = vmatprep.mubr.bf16.mxu0 %v1848_v59  ;;  %v736_v5 = vmul.f32 %v1935_v31, %v1705_v62  ;;  %v737_v29 = vmul.f32 %v1949_v45, %v1705_v62  ;;  %v772_v30 = vpack.c.bf16 %v721_v19, %v720_v18 }
  0x7d   :  { %678 = vmatprep.mubr.bf16.mxu1 %v1875_v26  ;;  %v722_v32 = vmul.f32 %v1964_v56, %v1646_v16  ;;  %v723_v24 = vmul.f32 %v1970_v63, %v1646_v16  ;;  %v788_v28 = vpack.c.bf16 %v753_v22, %v752_v23  ;;  %v754_v38 = vmul.f32 %v1964_v56, %v1649_v17 }
  0x7e   :  { %1273 = vmatpush3.bf16.msra.mxu0 %v761_v50  ;;  %v755_v39 = vmul.f32 %v1970_v63, %v1649_v17  ;;  %v706_v41 = vmul.f32 %v1964_v56, %v1699_v61  ;;  %v707_v42 = vmul.f32 %v1970_v63, %v1699_v61  ;;  %v738_v40 = vmul.f32 %v1964_v56, %v1705_v62 }
  0x7f   :  { %1301 = vmatpush3.bf16.msra.mxu1 %v777_v4  ;;  %1274 = vmatprep.subr.bf16.mxu0 %v770_v54  ;;  %v739_v16 = vmul.f32 %v1970_v63, %v1705_v62  ;;  %v764_v43 = vpack.c.bf16 %v705_v21, %v704_v9  ;;  %v780_v34 = vpack.c.bf16 %v737_v29, %v736_v5 }
  0x80   :  { %1302 = vmatprep.subr.bf16.mxu1 %v786_v57  ;;  %v773_v17 = vpack.c.bf16 %v723_v24, %v722_v32  ;;  %v724_v46 = vmul.f32 %v1935_v31, %v1748_v2  ;;  %v725_v61 = vmul.f32 %v1949_v45, %v1748_v2  ;;  %v789_v36 = vpack.c.bf16 %v755_v39, %v754_v38 }
  0x81   :  { %630 = vmatmul.mubr.bf16.gmra.mrb[12].mxu0 %v1893_v47  ;;  %v756_v62 = vmul.f32 %v1935_v31, %v1751_v7  ;;  %v765_v50 = vpack.c.bf16 %v707_v42, %v706_v41  ;;  %v781_v4 = vpack.c.bf16 %v739_v16, %v738_v40  ;;  %v709_v25 = vmul.f32 %v1949_v45, %v1756_v8 }
  0x82   :  { %679 = vmatmul.mubr.bf16.gmra.mrb[12].mxu1 %v1898_v49  ;;  %1275 = vmatpush3.bf16.msra.mxu0 %v762_v1  ;;  %v740_v51 = vmul.f32 %v1935_v31, %v1759_v12  ;;  %v741_v52 = vmul.f32 %v1949_v45, %v1759_v12  ;;  %v774_v53 = vpack.c.bf16 %v725_v61, %v724_v46 }
  0x83   :  { %1303 = vmatpush3.bf16.msra.mxu1 %v778_v3  ;;  %1276 = vmatprep.subr.bf16.mxu0 %v771_v14  ;;  %v726_v54 = vmul.f32 %v1964_v56, %v1748_v2  ;;  %v727_v20 = vmul.f32 %v1970_v63, %v1748_v2  ;;  %v758_v57 = vmul.f32 %v1964_v56, %v1751_v7 }
  0x84   :  { %1304 = vmatprep.subr.bf16.mxu1 %v787_v15  ;;  %824 = vmatprep.mubr.bf16.mxu0 %v1518_v11  ;;  %v757_v11 = vmul.f32 %v1949_v45, %v1751_v7  ;;  %v782_v45 = vpack.c.bf16 %v741_v52, %v740_v51  ;;  %v710_v60 = vmul.f32 %v1964_v56, %v1756_v8 }
  0x85   :  { %873 = vmatprep.mubr.bf16.mxu1 %v1523_v13  ;;  %v708_v13 = vmul.f32 %v1935_v31, %v1756_v8  ;;  %v759_v31 = vmul.f32 %v1970_v63, %v1751_v7  ;;  %v711_v48 = vmul.f32 %v1970_v63, %v1756_v8  ;;  %v775_v2 = vpack.c.bf16 %v727_v20, %v726_v54  ;;  %v1357_v8 = vld [vmem:[%s2178_s3] sm:$0xff]  }
  0x86   :  { %1277 = vmatpush3.bf16.msra.mxu0 %v763_v27  ;;  %v790_v55 = vpack.c.bf16 %v757_v11, %v756_v62  ;;  %v742_v33 = vmul.f32 %v1964_v56, %v1759_v12  ;;  %v743_v10 = vmul.f32 %v1970_v63, %v1759_v12  ;;  %v1358_v12 = vld [vmem:[%s2178_s3 + $0x8] sm:$0xff]   ;;  %s1454_s3 = smov [#allocation7]  }
  0x87   :  { %1305 = vmatpush3.bf16.msra.mxu1 %v779_v35  ;;  %1278 = vmatprep.subr.bf16.mxu0 %v772_v30  ;;  %v766_v58 = vpack.c.bf16 %v709_v25, %v708_v13  ;;  %v791_v7 = vpack.c.bf16 %v759_v31, %v758_v57  ;;  %v767_v0 = vpack.c.bf16 %v711_v48, %v710_v60  ;;  %s1104_s17 = sshll.u32 %s1454_s3, 4  ;;  %s1105_s17 = int_to_ptr.vmem [resolvable:$true] %s1104_s17 }
  0x88   :  { %1306 = vmatprep.subr.bf16.mxu1 %v788_v28  ;;  %v783_v1 = vpack.c.bf16 %v743_v10, %v742_v33  ;;  %s1420_s1 = scalar_lea.vmem %s1105_s17, 64  ;;  %p1425_p3 = scmp.lt.s32.totalorder %s1105_s17, %s1105_s17 }
  0x89   :  { %p1421_p2 = scmp.ne.s32.totalorder %s1105_s17, %s1420_s1  ;;  %p1426_p4 = scmp.lt.s32.totalorder %s1420_s1, %s1420_s1 }
  0x8a   :  { %1279 = vmatpush3.bf16.msra.mxu0 %v764_v43 }
  0x8b   :  { %1307 = vmatpush3.bf16.msra.mxu1 %v780_v34  ;;  %1280 = vmatprep.subr.bf16.mxu0 %v773_v17  ;;  %p1427_p5 = por %p1426_p4, %p1425_p3 }
  0x8c   :  { %1308 = vmatprep.subr.bf16.mxu1 %v789_v36 }
  0x8d   :  { %p1428_p6 = pnand %p1427_p5, %p1421_p2 }
  0x8e   :  { %1281 = vmatpush3.bf16.msra.mxu0 %v765_v50 }
  0x8f   :  { %1309 = vmatpush3.bf16.msra.mxu1 %v781_v4  ;;  %1282 = vmatprep.subr.bf16.mxu0 %v774_v53 }
  0x90   :  { %1310 = vmatprep.subr.bf16.mxu1 %v790_v55 }
  0x92   :  { %1283 = vmatpush3.bf16.msra.mxu0 %v766_v58 }
  0x93   :  { %1311 = vmatpush3.bf16.msra.mxu1 %v782_v45  ;;  %1284 = vmatprep.subr.bf16.mxu0 %v775_v2 }
  0x94   :  { %1312 = vmatprep.subr.bf16.mxu1 %v791_v7 }
  0x96   :  { %1285 = vmatpush3.bf16.msra.mxu0 %v767_v0 }
  0x97   :  { %1313 = vmatpush3.bf16.msra.mxu1 %v783_v1  ;;  %1329 = vmatprep.subr.bf16.mxu0 %v1511_v6 }
  0x99   :  { %825 = vmatmul.mubr.bf16.vlgmr.msra.gmra.mrb[16].mxu0 %v1813_v37 }
  0x9a   :  { %874 = vmatmul.mubr.bf16.vlgmr.msra.gmra.mrb[16].mxu1 %v1824_v44  ;;  %832 = vmatprep.mubr.bf16.mxu0 %v1848_v59 }
  0x9b   :  { %881 = vmatprep.mubr.bf16.mxu1 %v1875_v26  ;;  %1330 = vmatpush3.bf16.msra.mxu0 %v1511_v6 }
  0xa1   :  { %833 = vmatmul.mubr.bf16.gmra.mrb[20].mxu0 %v1893_v47 }
  0xa2   :  { %882 = vmatmul.mubr.bf16.gmra.mrb[20].mxu1 %v1898_v49  ;;  %1331 = vmatprep.mubr.msk.bf16.mxu0 %vm998_vm0, %v1357_v8 }
  0xa9   :  { %1332 = vmatmul.mubr.msk.bf16.vlgmr.msra.gmra.mrb[24].mxu0 %vm998_vm0, %v1358_v12 }
 0x12c   :  { %v1174_v37 = vpop.f32.mrb[0].mxu0 }
 0x12d   :  { %v1202_v44 = vpop.f32.mrb[0].mxu1  ;;  %v1175_v59 = vpop.f32.mrb[1].mxu0 }
 0x12e   :  { %v1176_v26 = vadd.f32 %v1175_v59, %v1174_v37  ;;  %v1203_v6 = vpop.f32.mrb[1].mxu1  ;;  %v1177_v56 = vpop.f32.mrb[2].mxu0 }
 0x12f   :  { %v1204_v63 = vadd.f32 %v1203_v6, %v1202_v44  ;;  %v1205_v3 = vpop.f32.mrb[2].mxu1  ;;  %v1178_v14 = vpop.f32.mrb[3].mxu0 }
 0x130   :  { %v1179_v18 = vadd.f32 %v1178_v14, %v1177_v56  ;;  %v1206_v19 = vpop.f32.mrb[3].mxu1  ;;  %v917_v56 = vpop.permute.xlu0 %916 }
 0x131   :  { %v2118_v47 = vadd.f32 %v1204_v63, %v1176_v26  ;;  %v1207_v49 = vadd.f32 %v1206_v19, %v1205_v3 }
 0x133   :  { %v2120_v15 = vadd.f32 %v1207_v49, %v1179_v18  ;;  %v890_v4 = vmul.f32 %v2118_v47, %v2118_v47 }
 0x134   :  { %v1180_v23 = vpop.f32.mrb[4].mxu0 }
 0x135   :  { %v1181_v27 = vpop.f32.mrb[5].mxu0  ;;  %v891_v52 = vmul.f32 %v2120_v15, %v2120_v15 }
 0x136   :  { %v1182_v9 = vadd.f32 %v1181_v27, %v1180_v23  ;;  %v1183_v5 = vpop.f32.mrb[6].mxu0 }
 0x137   :  { %v1208_v22 = vpop.f32.mrb[4].mxu1  ;;  %v1184_v30 = vpop.f32.mrb[7].mxu0 }
 0x138   :  { %v1209_v35 = vpop.f32.mrb[5].mxu1  ;;  %v1185_v28 = vadd.f32 %v1184_v30, %v1183_v5 }
 0x139   :  { %v1210_v21 = vadd.f32 %v1209_v35, %v1208_v22  ;;  %v1211_v29 = vpop.f32.mrb[6].mxu1 }
 0x13a   :  { %v1212_v32 = vpop.f32.mrb[7].mxu1 }
 0x13b   :  { %v2122_v24 = vadd.f32 %v1210_v21, %v1182_v9  ;;  %v1213_v38 = vadd.f32 %v1212_v32, %v1211_v29  ;;  %v922_v32 = vpop.permute.xlu0 %921 }
 0x13d   :  { %v2124_v39 = vadd.f32 %v1213_v38, %v1185_v28  ;;  %v892_v1 = vmul.f32 %v2122_v24, %v2122_v24 }
 0x13f   :  { %v893_v37 = vmul.f32 %v2124_v39, %v2124_v39 }
 0x14c   :  { %v1230_v41 = vpop.f32.mrb[8].mxu0 }
 0x14d   :  { %v1258_v42 = vpop.f32.mrb[8].mxu1  ;;  %v1231_v40 = vpop.f32.mrb[9].mxu0 }
 0x14e   :  { %v1232_v16 = vadd.f32 %v1231_v40, %v1230_v41  ;;  %v1259_v43 = vpop.f32.mrb[9].mxu1  ;;  %v1233_v34 = vpop.f32.mrb[10].mxu0 }
 0x14f   :  { %v1260_v17 = vadd.f32 %v1259_v43, %v1258_v42  ;;  %v1261_v46 = vpop.f32.mrb[10].mxu1  ;;  %v1234_v61 = vpop.f32.mrb[11].mxu0 }
 0x150   :  { %v1235_v36 = vadd.f32 %v1234_v61, %v1233_v34  ;;  %v1262_v62 = vpop.f32.mrb[11].mxu1 }
 0x151   :  { %v2126_v11 = vadd.f32 %v1260_v17, %v1232_v16  ;;  %v1263_v50 = vadd.f32 %v1262_v62, %v1261_v46 }
 0x153   :  { %v894_v13 = vmul.f32 %v2126_v11, %v2126_v11  ;;  %v2132_v25 = vadd.f32 %v1263_v50, %v1235_v36 }
 0x154   :  { %v1236_v51 = vpop.f32.mrb[12].mxu0 }
 0x155   :  { %v895_v53 = vmul.f32 %v2132_v25, %v2132_v25  ;;  %v1264_v54 = vpop.f32.mrb[12].mxu1  ;;  %v1237_v20 = vpop.f32.mrb[13].mxu0  ;;  %v898_v55 = vadd.f32 %v894_v13, %v890_v4 }
 0x156   :  { %v1238_v57 = vadd.f32 %v1237_v20, %v1236_v51  ;;  %v1265_v31 = vpop.f32.mrb[13].mxu1  ;;  %v1239_v58 = vpop.f32.mrb[14].mxu0 }
 0x157   :  { %v1266_v45 = vadd.f32 %v1265_v31, %v1264_v54  ;;  %v1267_v60 = vpop.f32.mrb[14].mxu1  ;;  %v1240_v48 = vpop.f32.mrb[15].mxu0  ;;  %v899_v2 = vadd.f32 %v895_v53, %v891_v52 }
 0x158   :  { %v1241_v33 = vadd.f32 %v1240_v48, %v1239_v58  ;;  %v1268_v10 = vpop.f32.mrb[15].mxu1  ;;  %v927_v53 = vpop.permute.xlu1 %926 }
 0x159   :  { %v2138_v7 = vadd.f32 %v1266_v45, %v1238_v57  ;;  %v1269_v0 = vadd.f32 %v1268_v10, %v1267_v60 }
 0x15b   :  { %v896_v8 = vmul.f32 %v2138_v7, %v2138_v7  ;;  %v2144_v12 = vadd.f32 %v1269_v0, %v1241_v33 }
 0x15c   :  { %v932_v10 = vpop.permute.xlu1 %931 }
 0x15d   :  { %v897_v44 = vmul.f32 %v2144_v12, %v2144_v12  ;;  %v900_v59 = vadd.f32 %v896_v8, %v892_v1 }
 0x15f   :  { %v901_v26 = vadd.f32 %v897_v44, %v893_v37 }
 0x16c   :  { %v1286_v6 = vpop.f32.mrb[16].mxu0 }
 0x16d   :  { %v1314_v63 = vpop.f32.mrb[16].mxu1  ;;  %v1287_v3 = vpop.f32.mrb[17].mxu0 }
 0x16e   :  { %v1288_v14 = vadd.f32 %v1287_v3, %v1286_v6  ;;  %v1315_v18 = vpop.f32.mrb[17].mxu1  ;;  %v1289_v19 = vpop.f32.mrb[18].mxu0 }
 0x16f   :  { %v1316_v49 = vadd.f32 %v1315_v18, %v1314_v63  ;;  %v1317_v23 = vpop.f32.mrb[18].mxu1  ;;  %v1290_v22 = vpop.f32.mrb[19].mxu0 }
 0x170   :  { %v1291_v27 = vadd.f32 %v1290_v22, %v1289_v19  ;;  %v1318_v35 = vpop.f32.mrb[19].mxu1 }
 0x171   :  { %v876_v9 = vadd.f32 %v1316_v49, %v1288_v14  ;;  %v1319_v21 = vadd.f32 %v1318_v35, %v1317_v23 }
 0x173   :  { %v2150_v5 = vadd.f32 %v1319_v21, %v1291_v27  ;;  %v902_v29 = vmul.f32 %v876_v9, %v876_v9 }
 0x174   :  { %v1292_v30 = vpop.f32.mrb[20].mxu0 }
 0x175   :  { %v906_v28 = vadd.f32 %v902_v29, %v898_v55  ;;  %v1320_v38 = vpop.f32.mrb[20].mxu1  ;;  %v1293_v41 = vpop.f32.mrb[21].mxu0  ;;  %v903_v42 = vmul.f32 %v2150_v5, %v2150_v5 }
 0x176   :  { %v1294_v40 = vadd.f32 %v1293_v41, %v1292_v30  ;;  %v1321_v16 = vpop.f32.mrb[21].mxu1  ;;  %v1295_v43 = vpop.f32.mrb[22].mxu0 }
 0x177   :  { %v934_v34 = vmul.f32 %v917_v56, %v906_v28  ;;  %v1322_v17 = vadd.f32 %v1321_v16, %v1320_v38  ;;  %v1323_v46 = vpop.f32.mrb[22].mxu1  ;;  %v907_v61 = vadd.f32 %v903_v42, %v899_v2  ;;  %v1296_v36 = vpop.f32.mrb[23].mxu0 }
 0x178   :  { %v1297_v62 = vadd.f32 %v1296_v36, %v1295_v43  ;;  %v1324_v50 = vpop.f32.mrb[23].mxu1 }
 0x179   :  { %v1122_v4 = vmul.f32 -1.442695, %v934_v34  ;;  %v884_v13 = vadd.f32 %v1322_v17, %v1294_v40  ;;  %v935_v51 = vmul.f32 %v922_v32, %v907_v61  ;;  %v1325_v52 = vadd.f32 %v1324_v50, %v1323_v46 }
 0x17b   :  { %1360 = vpow2.f32 %v1122_v4  ;;  %v904_v54 = vmul.f32 %v884_v13, %v884_v13  ;;  %v1123_v20 = vmul.f32 -1.442695, %v935_v51  ;;  %v887_v55 = vadd.f32 %v1325_v52, %v1297_v62 }
 0x17c   :  { %v1333_v57 = vpop.f32.mrb[24].mxu0 }
 0x17d   :  { %v908_v31 = vadd.f32 %v904_v54, %v900_v59  ;;  %1362 = vpow2.f32 %v1123_v20  ;;  %v905_v58 = vmul.f32 %v887_v55, %v887_v55  ;;  %v1039_v45 = vpop.f32.mrb[25].mxu0 }
 0x17e   :  { %v1334_v60 = vpop.f32.mrb[26].mxu0 }
 0x17f   :  { %v936_v48 = vmul.f32 %v927_v53, %v908_v31  ;;  %v909_v2 = vadd.f32 %v905_v58, %v901_v26  ;;  %v1042_v33 = vpop.f32.mrb[27].mxu0 }
 0x181   :  { %v1124_v0 = vmul.f32 -1.442695, %v936_v48  ;;  %v937_v1 = vmul.f32 %v932_v10, %v909_v2 }
 0x183   :  { %1364 = vpow2.f32 %v1124_v0  ;;  %v1125_v8 = vmul.f32 -1.442695, %v937_v1 }
 0x185   :  { %v1361_v37 = vpop.eup %1360  ;;  %1366 = vpow2.f32 %v1125_v8 }
 0x186   :  { %v950_v44 = vadd.f32 1.0, %v1361_v37 }
 0x187   :  { %v1363_v6 = vpop.eup %1362 }
 0x188   :  { %1368 = vrcp.f32 %v950_v44  ;;  %v951_v56 = vadd.f32 1.0, %v1363_v6 }
 0x18a   :  { %1370 = vrcp.f32 %v951_v56 }
 0x18d   :  { %v1365_v59 = vpop.eup %1364 }
 0x18e   :  { %v952_v63 = vadd.f32 1.0, %v1365_v59 }
 0x18f   :  { %v1367_v3 = vpop.eup %1366 }
 0x190   :  { %1372 = vrcp.f32 %v952_v63  ;;  %v953_v14 = vadd.f32 1.0, %v1367_v3 }
 0x192   :  { %v1369_v18 = vpop.eup %1368  ;;  %1374 = vrcp.f32 %v953_v14 }
 0x193   :  { %v962_v26 = vmul.f32 %v1369_v18, %v934_v34 }
 0x194   :  { %v1371_v19 = vpop.eup %1370 }
 0x195   :  { %v963_v49 = vmul.f32 %v1371_v19, %v935_v51  ;;  %v966_v23 = vmul.f32 %v962_v26, %v2118_v47  ;;  %v970_v22 = vmul.f32 %v962_v26, %v2126_v11  ;;  %v974_v27 = vmul.f32 %v962_v26, %v876_v9 }
 0x197   :  { %v1054_v35 = vmul.f32 %v1039_v45, %v966_v23  ;;  %v1067_v21 = vmul.f32 %v1039_v45, %v970_v22  ;;  %v1080_v29 = vmul.f32 %v1039_v45, %v974_v27  ;;  %v967_v30 = vmul.f32 %v963_v49, %v2120_v15 }
 0x198   :  { %v971_v32 = vmul.f32 %v963_v49, %v2132_v25  ;;  %v975_v28 = vmul.f32 %v963_v49, %v2150_v5 }
 0x199   :  { %v1055_v38 = vmul.f32 %v1042_v33, %v967_v30 }
 0x19a   :  { %v1373_v41 = vpop.eup %1372  ;;  %v1068_v42 = vmul.f32 %v1042_v33, %v971_v32  ;;  %v1081_v40 = vmul.f32 %v1042_v33, %v975_v28 }
 0x19b   :  { %v964_v16 = vmul.f32 %v1373_v41, %v936_v48  ;;  %v1058_v43 = vadd.f32 %v1055_v38, %v1054_v35 }
 0x19c   :  { %v1375_v34 = vpop.eup %1374  ;;  %v1071_v47 = vadd.f32 %v1068_v42, %v1067_v21  ;;  %v1084_v17 = vadd.f32 %v1081_v40, %v1080_v29 }
 0x19d   :  { %v965_v11 = vmul.f32 %v1375_v34, %v937_v1  ;;  %v968_v9 = vmul.f32 %v964_v16, %v2122_v24  ;;  %v972_v46 = vmul.f32 %v964_v16, %v2138_v7  ;;  %v976_v61 = vmul.f32 %v964_v16, %v884_v13 }
 0x19f   :  { %v1056_v15 = vmul.f32 %v1333_v57, %v968_v9  ;;  %v1069_v36 = vmul.f32 %v1333_v57, %v972_v46  ;;  %v1082_v25 = vmul.f32 %v1333_v57, %v976_v61  ;;  %v969_v5 = vmul.f32 %v965_v11, %v2124_v39 }
 0x1a0   :  { %v973_v62 = vmul.f32 %v965_v11, %v2144_v12  ;;  %v977_v50 = vmul.f32 %v965_v11, %v887_v55 }
 0x1a1   :  { %v1057_v4 = vmul.f32 %v1334_v60, %v969_v5  ;;  %v1059_v51 = vadd.f32 %v1058_v43, %v1056_v15  ;;  %v1072_v52 = vadd.f32 %v1071_v47, %v1069_v36  ;;  %v1085_v53 = vadd.f32 %v1084_v17, %v1082_v25 }
 0x1a2   :  { %v1070_v54 = vmul.f32 %v1334_v60, %v973_v62  ;;  %v1083_v20 = vmul.f32 %v1334_v60, %v977_v50 }
 0x1a3   :  { %v1060_v31 = vadd.f32 %v1059_v51, %v1057_v4 }
 0x1a4   :  { %v1073_v58 = vadd.f32 %v1072_v52, %v1070_v54  ;;  %v1086_v24 = vadd.f32 %v1085_v53, %v1083_v20 }
 0x1a5   :  { %v1061_v45 = vrot.slane %v1060_v31, 4 }
 0x1a6   :  { %v1074_v7 = vrot.slane %v1073_v58, 4  ;;  %v1087_v13 = vrot.slane %v1086_v24, 4 }
 0x1a7   :  { %v1062_v48 = vadd.f32 %v1061_v45, %v1060_v31 }
 0x1a8   :  { %v1075_v2 = vadd.f32 %v1074_v7, %v1073_v58  ;;  %v1088_v57 = vadd.f32 %v1087_v13, %v1086_v24 }
 0x1a9   :  { %v1063_v33 = vrot.slane %v1062_v48, 2 }
 0x1aa   :  { %v1076_v39 = vrot.slane %v1075_v2, 2  ;;  %v1089_v10 = vrot.slane %v1088_v57, 2 }
 0x1ab   :  { %v1064_v12 = vadd.f32 %v1063_v33, %v1062_v48 }
 0x1ac   :  { %v1077_v55 = vadd.f32 %v1076_v39, %v1075_v2  ;;  %v1090_v0 = vadd.f32 %v1089_v10, %v1088_v57 }
 0x1ad   :  { %v1065_v1 = vrot.slane %v1064_v12, 1 }
 0x1ae   :  { %v1078_v8 = vrot.slane %v1077_v55, 1  ;;  %v1091_v37 = vrot.slane %v1090_v0, 1 }
 0x1af   :  { %v1066_v44 = vadd.f32 %v1065_v1, %v1064_v12 }
 0x1b0   :  { %v1079_v60 = vadd.f32 %v1078_v8, %v1077_v55  ;;  %v1092_v6 = vadd.f32 %v1091_v37, %v1090_v0 }
 0x1b2   :  { %v1094_v56 = vsel %vm1093_vm1, %v1066_v44, %v1079_v60 }
 0x1b3   :  { %v1096_v59 = vsel %vm1095_vm2, %v1094_v56, %v1092_v6 }
 0x1b4   :  { %1097 = vst [vmem:[#allocation7] sm:$0x7] %v1096_v59 }
 0x1b5   :  { %1431 = shalt.err (!%p1428_p6)
}
 0x1b6   :  { %s1432_s20 = scalar_lea.hbm %s2180_s5, 64 }
 0x1b7   :  { %p1433_p7 = scmp.ne.s32.totalorder %s2180_s5, %s1432_s20  ;;  %p1436_p8 = scmp.lt.u32.totalorder %s1432_s20, %s2180_s5 }
 0x1b9   :  { %p1438_p9 = pnand %p1436_p8, %p1433_p7 }
 0x1bb   :  { %1441 = shalt.err (!%p1438_p9)
}
 0x1bc   :  { %1107 = dma.vmem_to_hbm [thread:$0]  %s1105_s17, 64, %s2180_s5, [#allocation4]  }
 0x1bd   :  { %1446 = dma.done.wait [#allocation4], 64  }
 0x1be   :  { %1447 = vsyncadd [#allocation4], 4294967232 }
 0x1bf   :  { %1111 = vsyncpa [#allocation3], 1 }
 0x1c0   :  { %1112 = vsyncpa [#allocation6], 1 }
 0x1c1   :  { %1113 = vsyncpa [#allocation4], 1 }

</bundles_post_ra>
